<compile_context>
chip_gen: v7x
topology: tpu7x:2x2x1
jax: 0.10.0
libtpu: 0.0.40
codegen_flags: <defaults>
</compile_context>

<pallas_src>
import functools
import math

import jax
import jax.numpy as jnp
from jax.experimental import pallas as pl
from jax.experimental.pallas import tpu as pltpu


def _round_up(x: int, m: int) -> int:
    return ((x + m - 1) // m) * m


# ---------------------------------------------------------------------------
# Fused RMSNorm + SwiGLU FFN + residual kernel
# ---------------------------------------------------------------------------
def _ffn_block_kernel(x_ref, nw_ref, w12_ref, w3_ref, o_ref, acc_ref, *, d_true, eps):
    """One (row-tile, hidden-chunk) grid step.

    x_ref   : (tm, Dp)     residual / norm input (original dtype)
    nw_ref  : (1, Dp)      RMSNorm weight (f32)
    w12_ref : (Dp, 2*tk)   [W1 chunk | W2 chunk] for this hidden chunk (bf16)
    w3_ref  : (tk, Dp)     W3 rows for this hidden chunk (bf16)
    o_ref   : (tm, Dp)     output = x + FFN(norm(x))
    acc_ref : (tm, Dp)     f32 VMEM accumulator
    """
    j = pl.program_id(1)

    @pl.when(j == 0)
    def _():
        acc_ref[...] = jnp.zeros_like(acc_ref)

    x = x_ref[...].astype(jnp.float32)
    # RMSNorm over the true feature count (padded lanes are zero -> sum unaffected).
    norm = jnp.sqrt(jnp.sum(x * x, axis=-1, keepdims=True)) * (d_true ** -0.5)
    xn = (nw_ref[...] * x / (norm + eps)).astype(w12_ref.dtype)

    # One wide MXU matmul covers both gate branches (fused W1||W2).
    h = jnp.dot(xn, w12_ref[...], preferred_element_type=jnp.float32)   # (tm, 2*tk) f32
    tk = h.shape[-1] // 2
    h1 = h[:, :tk]
    h2 = h[:, tk:]
    gated = (h1 * jax.nn.sigmoid(h1)) * h2                              # silu(h1) * h2

    acc_ref[...] += jnp.dot(gated.astype(w3_ref.dtype), w3_ref[...],
                            preferred_element_type=jnp.float32)

    @pl.when(j == pl.num_programs(1) - 1)
    def _():
        o_ref[...] = (x + acc_ref[...]).astype(o_ref.dtype)   # fused residual add


def ffn_block_pallas(x_bsd, norm_w, w1, w2, w3, *, tm=256, tk=512,
                     compute_dtype=jnp.bfloat16, eps=1e-8):
    """out = x + SwiGLU(RMSNorm(x; norm_w)).  w1,w2: [D,H], w3: [H,D]."""
    B, S, D = x_bsd.shape
    H = w1.shape[1]
    Do = w3.shape[1]
    assert Do == D, "fused residual requires dim_out == d_model"
    M = B * S

    tm = min(tm, _round_up(M, 8))
    tk = min(tk, _round_up(H, 128))
    Mp = _round_up(M, tm)
    Hp = _round_up(H, tk)
    Dp = _round_up(D, 128)                      # lane-dense output (avoid masked vst)
    n_chunks = Hp // tk

    x2d = jnp.pad(x_bsd.reshape(M, D), ((0, Mp - M), (0, Dp - D)))
    nw = jnp.pad(norm_w.reshape(1, D).astype(jnp.float32), ((0, 0), (0, Dp - D)))
    w1p = jnp.pad(w1, ((0, Dp - D), (0, Hp - H))).astype(compute_dtype)
    w2p = jnp.pad(w2, ((0, Dp - D), (0, Hp - H))).astype(compute_dtype)
    # Pack per hidden chunk: columns = [W1_c0 | W2_c0 | W1_c1 | W2_c1 | ...].
    # (In a real model this packing would be done once at weight-load time.)
    w12 = jnp.concatenate(
        [w1p.reshape(Dp, n_chunks, tk), w2p.reshape(Dp, n_chunks, tk)], axis=-1
    ).reshape(Dp, 2 * Hp)
    w3p = jnp.pad(w3, ((0, Hp - H), (0, Dp - D))).astype(compute_dtype)

    grid = (Mp // tm, n_chunks)
    itemsize_c = jnp.dtype(compute_dtype).itemsize
    cost = pl.CostEstimate(
        flops=2 * M * (2 * D * H + H * D),
        transcendentals=M * H,                                  # sigmoid in the SiLU gate
        bytes_accessed=(Dp * 2 * Hp + Hp * Dp) * itemsize_c
                       + 2 * Mp * Dp * x_bsd.dtype.itemsize,
    )

    out = pl.pallas_call(
        functools.partial(_ffn_block_kernel, d_true=D, eps=eps),
        out_shape=jax.ShapeDtypeStruct((Mp, Dp), x_bsd.dtype),
        grid_spec=pltpu.PrefetchScalarGridSpec(
            num_scalar_prefetch=0,
            grid=grid,
            in_specs=[
                # x tile: resident across the hidden ("arbitrary") axis.
                pl.BlockSpec((tm, Dp), lambda i, j: (i, 0)),
                pl.BlockSpec((1, Dp), lambda i, j: (0, 0)),
                # fused W1||W2 chunk, streamed along the hidden axis.
                pl.BlockSpec((Dp, 2 * tk), lambda i, j: (0, j)),
                # W3 row-chunk, streamed along the hidden axis.
                pl.BlockSpec((tk, Dp), lambda i, j: (j, 0)),
            ],
            out_specs=pl.BlockSpec((tm, Dp), lambda i, j: (i, 0)),
            scratch_shapes=[pltpu.VMEM((tm, Dp), jnp.float32)],
        ),
        compiler_params=pltpu.CompilerParams(
            dimension_semantics=("parallel", "arbitrary"),
            vmem_limit_bytes=48 * 1024 * 1024,
        ),
        cost_estimate=cost,
    )(x2d, nw, w12, w3p)

    return out[:M, :D].reshape(B, S, D)


# ---------------------------------------------------------------------------
# Fused RMSNorm + neural-memory retrieval + gate + residual kernel
# ---------------------------------------------------------------------------
def _memory_gate_kernel(x_ref, nw_ref, wq_ref, bq_ref, w0_ref, b0_ref,
                        w1_ref, b1_ref, gwx_ref, gwr_ref, gb_ref, o_ref,
                        *, d_true, eps):
    x = x_ref[...].astype(jnp.float32)
    norm = jnp.sqrt(jnp.sum(x * x, axis=-1, keepdims=True)) * (d_true ** -0.5)
    xn = nw_ref[...] * x / (norm + eps)                              # x_for_memory

    q = jnp.dot(xn, wq_ref[...], preferred_element_type=jnp.float32) + bq_ref[...]
    h = jax.nn.relu(jnp.dot(q, w0_ref[...], preferred_element_type=jnp.float32) + b0_ref[...])
    retr = jnp.dot(h, w1_ref[...], preferred_element_type=jnp.float32) + b1_ref[...]
    # gate = sigmoid(cat([xn, retr]) @ Wg + bg), with Wg split into its xn / retr row blocks.
    gate = jax.nn.sigmoid(
        jnp.dot(xn, gwx_ref[...], preferred_element_type=jnp.float32)
        + jnp.dot(retr, gwr_ref[...], preferred_element_type=jnp.float32)
        + gb_ref[...])
    o_ref[...] = (x + gate * retr).astype(o_ref.dtype)               # fused residual add


def memory_gate_pallas(x_bsd, params, *, tm=256, eps=1e-8):
    """out = x + sigmoid(gate([norm2(x) | retrieved])) * retrieved  (eval-mode LMM)."""
    B, S, D = x_bsd.shape
    Md = params["mem_wq"].shape[1]
    assert Md == D, "gate * retrieved broadcast requires memory_dim == d_model"
    M = B * S

    tm = min(tm, _round_up(M, 8))
    Mp = _round_up(M, tm)
    Dp = _round_up(D, 128)
    Mdp = _round_up(Md, 128)

    def padw(w, r, c):
        return jnp.pad(w.astype(jnp.float32), ((0, r - w.shape[0]), (0, c - w.shape[1])))

    def padb(b, c):
        return jnp.pad(b.astype(jnp.float32).reshape(1, -1), ((0, 0), (0, c - b.shape[0])))

    x2d = jnp.pad(x_bsd.reshape(M, D), ((0, Mp - M), (0, Dp - D)))
    nw = padb(params["norm2_w"], Dp)
    wq = padw(params["mem_wq"], Dp, Mdp)
    bq = padb(params["mem_bq"], Mdp)
    w0 = padw(params["lmm_w0"], Mdp, Mdp)
    b0 = padb(params["lmm_b0"], Mdp)
    w1 = padw(params["lmm_w1"], Mdp, Mdp)
    b1 = padb(params["lmm_b1"], Mdp)
    gwx = padw(params["gate_w"][:D], Dp, Dp)
    gwr = padw(params["gate_w"][D:], Mdp, Dp)
    gb = padb(params["gate_b"], Dp)

    full = lambda i: (0, 0)
    row = lambda i: (i, 0)
    cost = pl.CostEstimate(
        flops=2 * M * (D * Md + 2 * Md * Md + (D + Md) * D),
        transcendentals=M * D,
        bytes_accessed=4 * (Dp * Mdp + 2 * Mdp * Mdp + Dp * Dp + Mdp * Dp + 2 * Mp * Dp),
    )

    out = pl.pallas_call(
        functools.partial(_memory_gate_kernel, d_true=D, eps=eps),
        out_shape=jax.ShapeDtypeStruct((Mp, Dp), x_bsd.dtype),
        grid_spec=pltpu.PrefetchScalarGridSpec(
            num_scalar_prefetch=0,
            grid=(Mp // tm,),
            in_specs=[
                pl.BlockSpec((tm, Dp), row),       # x tile
                pl.BlockSpec((1, Dp), full),       # norm2 weight
                pl.BlockSpec((Dp, Mdp), full),     # mem_wq
                pl.BlockSpec((1, Mdp), full),      # mem_bq
                pl.BlockSpec((Mdp, Mdp), full),    # lmm_w0
                pl.BlockSpec((1, Mdp), full),      # lmm_b0
                pl.BlockSpec((Mdp, Mdp), full),    # lmm_w1
                pl.BlockSpec((1, Mdp), full),      # lmm_b1
                pl.BlockSpec((Dp, Dp), full),      # gate_w rows for xn
                pl.BlockSpec((Mdp, Dp), full),     # gate_w rows for retrieved
                pl.BlockSpec((1, Dp), full),       # gate_b
            ],
            out_specs=pl.BlockSpec((tm, Dp), row),
        ),
        compiler_params=pltpu.CompilerParams(
            dimension_semantics=("parallel",),
            vmem_limit_bytes=48 * 1024 * 1024,
        ),
        cost_estimate=cost,
    )(x2d, nw, wq, bq, w0, b0, w1, b1, gwx, gwr, gb)

    return out[:M, :D].reshape(B, S, D)


# ---------------------------------------------------------------------------
# RMSNorm Pallas kernel (used for norm1: w * x / (||x|| / sqrt(d) + eps))
# ---------------------------------------------------------------------------
def _rmsnorm_kernel(x_ref, w_ref, o_ref):
    x = x_ref[...].astype(jnp.float32)
    d = x.shape[-1]
    norm = jnp.sqrt(jnp.sum(x * x, axis=-1, keepdims=True)) * (d ** -0.5)
    o_ref[...] = (w_ref[...] * x / (norm + 1e-8)).astype(o_ref.dtype)


def rmsnorm_pallas(x_bsd, weight, *, tm=256):
    B, S, D = x_bsd.shape
    M = B * S
    tm = min(tm, _round_up(M, 8))
    Mp = _round_up(M, tm)
    x2d = jnp.pad(x_bsd.reshape(M, D), ((0, Mp - M), (0, 0)))
    w2d = weight.reshape(1, D)
    out = pl.pallas_call(
        _rmsnorm_kernel,
        out_shape=jax.ShapeDtypeStruct((Mp, D), x_bsd.dtype),
        grid_spec=pltpu.PrefetchScalarGridSpec(
            num_scalar_prefetch=0,
            grid=(Mp // tm,),
            in_specs=[pl.BlockSpec((tm, D), lambda i: (i, 0)),
                      pl.BlockSpec((1, D), lambda i: (0, 0))],
            out_specs=pl.BlockSpec((tm, D), lambda i: (i, 0)),
        ),
        compiler_params=pltpu.CompilerParams(dimension_semantics=("parallel",)),
    )(x2d, w2d)
    return out[:M].reshape(B, S, D)


# ---------------------------------------------------------------------------
# Pure-JAX pieces (RoPE attention) and f32 / numerics-matched references
# ---------------------------------------------------------------------------
def rmsnorm_ref(x, w, eps=1e-8):
    norm = jnp.sqrt(jnp.sum(x * x, axis=-1, keepdims=True)) * (x.shape[-1] ** -0.5)
    return w * x / (norm + eps)


def ffn_block_ref_f32(x, nw, w1, w2, w3):
    xn = rmsnorm_ref(x, nw)
    h1 = xn @ w1
    h2 = xn @ w2
    return x + (h1 * jax.nn.sigmoid(h1) * h2) @ w3


def ffn_block_ref_bf16(x, nw, w1, w2, w3):
    """Numerics-matched reference for the fused FFN kernel (bf16 matmuls, f32 norm/residual)."""
    xn = rmsnorm_ref(x.astype(jnp.float32), nw)
    xb = xn.astype(jnp.bfloat16)
    h1 = jnp.dot(xb, w1.astype(jnp.bfloat16), preferred_element_type=jnp.float32)
    h2 = jnp.dot(xb, w2.astype(jnp.bfloat16), preferred_element_type=jnp.float32)
    g = (h1 * jax.nn.sigmoid(h1)) * h2
    y = jnp.dot(g.astype(jnp.bfloat16), w3.astype(jnp.bfloat16),
                preferred_element_type=jnp.float32)
    return (x.astype(jnp.float32) + y).astype(x.dtype)


def memory_gate_ref(x, p, eps=1e-8):
    xn = rmsnorm_ref(x, p["norm2_w"], eps)
    q = xn @ p["mem_wq"] + p["mem_bq"]
    h = jax.nn.relu(q @ p["lmm_w0"] + p["lmm_b0"])
    retr = h @ p["lmm_w1"] + p["lmm_b1"]
    gate = jax.nn.sigmoid(jnp.concatenate([xn, retr], axis=-1) @ p["gate_w"] + p["gate_b"])
    return x + gate * retr


def rope_sin_cos(seq_len, head_dim, base=10000.0):
    inv_freq = 1.0 / (base ** (jnp.arange(0, head_dim, 2, dtype=jnp.float32) / head_dim))
    t = jnp.arange(seq_len, dtype=jnp.float32)
    sinusoid = jnp.einsum("i,j->ij", t, inv_freq)
    return jnp.sin(sinusoid), jnp.cos(sinusoid)


def apply_rotary_emb(x, sin, cos):
    # x: (B, H, S, hd); sin/cos: (S, hd//2). Matches the torch helper exactly.
    sin = sin[None, None, :, :]
    cos = cos[None, None, :, :]
    x1 = x[..., ::2]
    x2 = x[..., 1::2]
    return jnp.concatenate([x1 * cos - x2 * sin, x1 * sin + x2 * cos], axis=-1)


def attention_with_rope(x, params, n_heads, mask=None):
    # TODO(synk): attention core (RoPE + softmax(QK^T)V) and its projections stay as XLA ops;
    # a flash-style Pallas kernel is the natural next step.
    B, S, D = x.shape
    hd = D // n_heads

    def split_heads(t):
        return t.reshape(B, S, n_heads, hd).transpose(0, 2, 1, 3)

    q = split_heads(x @ params["attn_wq"])
    k = split_heads(x @ params["attn_wk"])
    v = split_heads(x @ params["attn_wv"])
    sin, cos = rope_sin_cos(S, hd)
    q = apply_rotary_emb(q, sin, cos)
    k = apply_rotary_emb(k, sin, cos)
    scores = jnp.einsum("bhqd,bhkd->bhqk", q, k) / math.sqrt(hd)
    if mask is not None:
        scores = jnp.where(mask == 0, -jnp.inf, scores)
    attn = jax.nn.softmax(scores, axis=-1)
    out = jnp.einsum("bhqk,bhkd->bhqd", attn, v)
    out = out.transpose(0, 2, 1, 3).reshape(B, S, D)
    return out @ params["attn_wo"]


def transformer_block_forward(x, params, n_heads, mask=None, *, use_pallas=True):
    """Eval-mode TransformerBlockWithMemory forward (dropout = identity).
    TODO(synk): the Titans online LMM parameter update (autograd + momentum step) only runs
    in training / update_lmm_at_test_time=True and is not implemented here; the unused
    k/v LMM projections are skipped accordingly."""
    if use_pallas:
        h_attn = attention_with_rope(rmsnorm_pallas(x, params["norm1_w"]), params, n_heads, mask)
        x = x + h_attn
        x = memory_gate_pallas(x, params)                 # fused norm2 + memory + gate + residual
        x = ffn_block_pallas(x, params["norm2_w"],        # torch block reuses norm2 for FFN input
                             params["ffn_w1"], params["ffn_w2"], params["ffn_w3"])
        return x

    h_attn = attention_with_rope(rmsnorm_ref(x, params["norm1_w"]), params, n_heads, mask)
    x = x + h_attn
    x = memory_gate_ref(x, params)
    x = ffn_block_ref_f32(x, params["norm2_w"],
                          params["ffn_w1"], params["ffn_w2"], params["ffn_w3"])
    return x


def init_params(key, d_model, ffn_dim, memory_dim):
    ks = jax.random.split(key, 20)

    def w(k, fan_in, fan_out):
        return jax.random.normal(k, (fan_in, fan_out), jnp.float32) / jnp.sqrt(fan_in)

    def b(k, n):
        return 0.01 * jax.random.normal(k, (n,), jnp.float32)

    return {
        "norm1_w": 1.0 + 0.1 * jax.random.normal(ks[0], (d_model,), jnp.float32),
        "norm2_w": 1.0 + 0.1 * jax.random.normal(ks[1], (d_model,), jnp.float32),
        "attn_wq": w(ks[2], d_model, d_model),
        "attn_wk": w(ks[3], d_model, d_model),
        "attn_wv": w(ks[4], d_model, d_model),
        "attn_wo": w(ks[5], d_model, d_model),
        "mem_wq": w(ks[6], d_model, memory_dim),
        "mem_bq": b(ks[7], memory_dim),
        "lmm_w0": w(ks[8], memory_dim, memory_dim),
        "lmm_b0": b(ks[9], memory_dim),
        "lmm_w1": w(ks[10], memory_dim, memory_dim),
        "lmm_b1": b(ks[11], memory_dim),
        "gate_w": w(ks[12], d_model + memory_dim, d_model),
        "gate_b": b(ks[13], d_model),
        "ffn_w1": w(ks[14], d_model, ffn_dim),
        "ffn_w2": w(ks[15], d_model, ffn_dim),
        "ffn_w3": w(ks[16], ffn_dim, d_model),
    }


if __name__ == "__main__":
    # Small, 128-lane-friendly config consistent with the module; ffn_dim=1024 with the
    # default hidden chunk tk=512 exercises the multi-chunk accumulation path.
    d_model, n_heads, ffn_dim, memory_dim = 128, 4, 1024, 128
    batch, seq = 2, 16

    key = jax.random.PRNGKey(0)
    kx, kp = jax.random.split(key)
    params = init_params(kp, d_model, ffn_dim, memory_dim)
    x = jax.random.normal(kx, (batch, seq, d_model), jnp.float32)

    # 1) Fused norm+SwiGLU+residual kernel vs numerics-matched (bf16 operand, f32 accum) ref.
    y_k = ffn_block_pallas(x, params["norm2_w"], params["ffn_w1"], params["ffn_w2"], params["ffn_w3"])
    jax.block_until_ready(y_k)
    y_r = ffn_block_ref_bf16(x, params["norm2_w"], params["ffn_w1"], params["ffn_w2"], params["ffn_w3"])
    assert y_k.shape == y_r.shape
    assert jnp.allclose(y_k, y_r, atol=2e-3, rtol=2e-3), float(jnp.max(jnp.abs(y_k - y_r)))

    # 2) Fused norm+memory+gate+residual kernel vs f32 XLA reference.
    m_k = memory_gate_pallas(x, params)
    jax.block_until_ready(m_k)
    m_r = memory_gate_ref(x, params)
    assert m_k.shape == m_r.shape
    assert jnp.allclose(m_k, m_r, atol=2e-2, rtol=2e-2), float(jnp.max(jnp.abs(m_k - m_r)))

    # 3) Full transformer block (all Pallas kernels) vs pure-f32 XLA reference.
    y = transformer_block_forward(x, params, n_heads, mask=None, use_pallas=True)
    jax.block_until_ready(y)
    y_ref = transformer_block_forward(x, params, n_heads, mask=None, use_pallas=False)
    assert y.shape == (batch, seq, d_model)
    assert jnp.allclose(y, y_ref, atol=5e-2, rtol=5e-2), float(jnp.max(jnp.abs(y - y_ref)))

    print("KERNEL_OK")
</pallas_src>

<mosaic_0001>
module attributes {stable_mosaic.version = 11 : i64} {
  func.func @_ffn_block_kernel(%arg0: i32, %arg1: i32, %arg2: memref<32x128xf32, #tpu.memory_space<vmem>>, %arg3: memref<1x128xf32, #tpu.memory_space<vmem>>, %arg4: memref<128x1024xbf16, #tpu.memory_space<vmem>>, %arg5: memref<512x128xbf16, #tpu.memory_space<vmem>>, %arg6: memref<32x128xf32, #tpu.memory_space<vmem>>, %arg7: memref<32x128xf32, #tpu.memory_space<vmem>>) attributes {dimension_semantics = [#tpu.dimension_semantics<parallel>, #tpu.dimension_semantics<arbitrary>], iteration_bounds = array<i64: 1, 2>, scalar_prefetch = 0 : i64, scratch_operands = 1 : i64, tpu.core_type = #tpu.core_type<tc>, window_params = [{transform_indices = @transform_0, window_bounds = array<i64: 32, 128>}, {pipeline_mode = #tpu.pipeline_mode<synchronous>, transform_indices = @transform_1, window_bounds = array<i64: 1, 128>}, {transform_indices = @transform_2, window_bounds = array<i64: 128, 1024>}, {transform_indices = @transform_3, window_bounds = array<i64: 512, 128>}, {transform_indices = @transform_4, window_bounds = array<i64: 32, 128>}]} {
    %c0_i32 = arith.constant 0 : i32
    %0 = arith.cmpi eq, %arg1, %c0_i32 : i32
    %1 = arith.extui %0 : i1 to i32
    %c0_i32_0 = arith.constant 0 : i32
    %2 = arith.cmpi ne, %1, %c0_i32_0 : i32
    scf.if %2 {
      %cst_18 = arith.constant 0.000000e+00 : f32
      %38 = vector.broadcast %cst_18 : f32 to vector<32x128xf32>
      %c0_19 = arith.constant 0 : index
      %c0_20 = arith.constant 0 : index
      %39 = vector.load %arg7[%c0_19, %c0_20] : memref<32x128xf32, #tpu.memory_space<vmem>>, vector<32x128xf32>
      tpu.vector_store %arg7[%c0_19, %c0_20], %38 {strides = array<i32>} : memref<32x128xf32, #tpu.memory_space<vmem>>, vector<32x128xf32>,
    } else {
    }
    %c0 = arith.constant 0 : index
    %c0_1 = arith.constant 0 : index
    %3 = vector.load %arg2[%c0, %c0_1] : memref<32x128xf32, #tpu.memory_space<vmem>>, vector<32x128xf32>
    %4 = arith.mulf %3, %3 : vector<32x128xf32>
    %cst = arith.constant dense<0.000000e+00> : vector<32xf32>
    %5 = vector.multi_reduction <add>, %4, %cst [1] : vector<32x128xf32> to vector<32xf32>
    %6 = vector.shape_cast %5 : vector<32xf32> to vector<32x1xf32>
    %7 = math.sqrt %6 : vector<32x1xf32>
    %cst_2 = arith.constant 0.0883883461 : f32
    %8 = vector.broadcast %cst_2 : f32 to vector<32x1xf32>
    %9 = arith.mulf %7, %8 : vector<32x1xf32>
    %c0_3 = arith.constant 0 : index
    %c0_4 = arith.constant 0 : index
    %10 = vector.load %arg3[%c0_3, %c0_4] : memref<1x128xf32, #tpu.memory_space<vmem>>, vector<1x128xf32>
    %11 = vector.broadcast %10 : vector<1x128xf32> to vector<32x128xf32>
    %12 = arith.mulf %11, %3 : vector<32x128xf32>
    %cst_5 = arith.constant 9.99999993E-9 : f32
    %13 = vector.broadcast %cst_5 : f32 to vector<32x1xf32>
    %14 = arith.addf %9, %13 : vector<32x1xf32>
    %15 = vector.broadcast %14 : vector<32x1xf32> to vector<32x128xf32>
    %16 = arith.divf %12, %15 : vector<32x128xf32>
    %17 = arith.truncf %16 : vector<32x128xf32> to vector<32x128xbf16>
    %c0_6 = arith.constant 0 : index
    %c0_7 = arith.constant 0 : index
    %18 = vector.load %arg4[%c0_6, %c0_7] : memref<128x1024xbf16, #tpu.memory_space<vmem>>, vector<128x1024xbf16>
    %cst_8 = arith.constant dense<0.000000e+00> : vector<32x1024xf32>
    %19 = tpu.matmul %17, %18, %cst_8 {dimension_numbers = #tpu.dot_dimension_numbers<[1], [0], [0], [1], [0, 0, 1, 1], [], []>} : vector<32x128xbf16>, vector<128x1024xbf16>, vector<32x1024xf32> -> vector<32x1024xf32>
    %20 = vector.extract_strided_slice %19 {offsets = [0, 0], sizes = [32, 512], strides = [1, 1]} : vector<32x1024xf32> to vector<32x512xf32>
    %21 = vector.extract_strided_slice %19 {offsets = [0, 512], sizes = [32, 512], strides = [1, 1]} : vector<32x1024xf32> to vector<32x512xf32>
    %22 = arith.negf %20 : vector<32x512xf32>
    %23 = math.exp %22 : vector<32x512xf32>
    %cst_9 = arith.constant 1.000000e+00 : f32
    %24 = vector.broadcast %cst_9 : f32 to vector<32x512xf32>
    %25 = arith.addf %24, %23 : vector<32x512xf32>
    %26 = arith.divf %24, %25 : vector<32x512xf32>
    %27 = arith.mulf %20, %26 : vector<32x512xf32>
    %28 = arith.mulf %27, %21 : vector<32x512xf32>
    %c0_10 = arith.constant 0 : index
    %c0_11 = arith.constant 0 : index
    %29 = vector.load %arg7[%c0_10, %c0_11] : memref<32x128xf32, #tpu.memory_space<vmem>>, vector<32x128xf32>
    %30 = arith.truncf %28 : vector<32x512xf32> to vector<32x512xbf16>
    %c0_12 = arith.constant 0 : index
    %c0_13 = arith.constant 0 : index
    %31 = vector.load %arg5[%c0_12, %c0_13] : memref<512x128xbf16, #tpu.memory_space<vmem>>, vector<512x128xbf16>
    %cst_14 = arith.constant dense<0.000000e+00> : vector<32x128xf32>
    %32 = tpu.matmul %30, %31, %cst_14 {dimension_numbers = #tpu.dot_dimension_numbers<[1], [0], [0], [1], [0, 0, 1, 1], [], []>} : vector<32x512xbf16>, vector<512x128xbf16>, vector<32x128xf32> -> vector<32x128xf32>
    %33 = arith.addf %29, %32 : vector<32x128xf32>
    %c0_15 = arith.constant 0 : index
    %c0_16 = arith.constant 0 : index
    %34 = vector.load %arg7[%c0_15, %c0_16] : memref<32x128xf32, #tpu.memory_space<vmem>>, vector<32x128xf32>
    tpu.vector_store %arg7[%c0_15, %c0_16], %33 {strides = array<i32>} : memref<32x128xf32, #tpu.memory_space<vmem>>, vector<32x128xf32>,
    %c1_i32 = arith.constant 1 : i32
    %35 = arith.cmpi eq, %arg1, %c1_i32 : i32
    %36 = arith.extui %35 : i1 to i32
    %c0_i32_17 = arith.constant 0 : i32
    %37 = arith.cmpi ne, %36, %c0_i32_17 : i32
    scf.if %37 {
      %c0_18 = arith.constant 0 : index
      %c0_19 = arith.constant 0 : index
      %38 = vector.load %arg7[%c0_18, %c0_19] : memref<32x128xf32, #tpu.memory_space<vmem>>, vector<32x128xf32>
      %39 = arith.addf %3, %38 : vector<32x128xf32>
      %c0_20 = arith.constant 0 : index
      %c0_21 = arith.constant 0 : index
      %40 = vector.load %arg6[%c0_20, %c0_21] : memref<32x128xf32, #tpu.memory_space<vmem>>, vector<32x128xf32>
      tpu.vector_store %arg6[%c0_20, %c0_21], %39 {strides = array<i32>} : memref<32x128xf32, #tpu.memory_space<vmem>>, vector<32x128xf32>,
    } else {
    }
    return
  }
  func.func @transform_0(%arg0: i32, %arg1: i32) -> (i32, i32) {
    %c0_i32 = arith.constant 0 : i32
    %c0_i32_0 = arith.constant 0 : i32
    return %arg0, %c0_i32 : i32, i32
  }
  func.func @transform_1(%arg0: i32, %arg1: i32) -> (i32, i32) {
    %c0_i32 = arith.constant 0 : i32
    %c0_i32_0 = arith.constant 0 : i32
    %c0_i32_1 = arith.constant 0 : i32
    return %c0_i32, %c0_i32_0 : i32, i32
  }
  func.func @transform_2(%arg0: i32, %arg1: i32) -> (i32, i32) {
    %c0_i32 = arith.constant 0 : i32
    %c0_i32_0 = arith.constant 0 : i32
    return %c0_i32, %arg1 : i32, i32
  }
  func.func @transform_3(%arg0: i32, %arg1: i32) -> (i32, i32) {
    %c0_i32 = arith.constant 0 : i32
    %c0_i32_0 = arith.constant 0 : i32
    return %arg1, %c0_i32 : i32, i32
  }
  func.func @transform_4(%arg0: i32, %arg1: i32) -> (i32, i32) {
    %c0_i32 = arith.constant 0 : i32
    %c0_i32_0 = arith.constant 0 : i32
    return %arg0, %c0_i32 : i32, i32
  }
}

</mosaic_0001>

<bundles_post_ra>
// kernel: tpu_custom_call.1
= control target key start
LH: loop header
LB: loop body
LE: loop exit
PB: predicated region body
PF: predicated region fallthrough
CT: control target
= control target key end

     0   :  { %9 = vsyncpa [#allocation4], 0  ;;  %s2652_s0 = inlined_call_operand.hbm [shape: f32[32,128], index: 0, kind: input, shape index: {}]   ;;  %s2653_s1 = inlined_call_operand.vmem [shape: f32[1,128], index: 1, kind: input, shape index: {}]   ;;  %s2654_s2 = inlined_call_operand.hbm [shape: bf16[128,2048], index: 2, kind: input, shape index: {}]   ;;  %s2655_s3 = inlined_call_operand.hbm [shape: bf16[1024,128], index: 3, kind: input, shape index: {}]   ;;  %s2656_s4 = inlined_call_operand.hbm [shape: f32[32,128], index: 4, kind: output, shape index: {}]  }
   0x1   :  { %10 = vsyncpa [#allocation7], 0 }
   0x2   :  { %12 = vsyncpa [#allocation7 + $0x1], 0 }
   0x3   :  { %13 = vsyncpa [#allocation5], 0  ;;  %s2194_s15 = smov 0   ;;  %s2196_s16 = smov 0  }
   0x4   :  { %s2198_s17 = smov 0   ;;  %s2200_s18 = smov 0  }
   0x5   :  { %s2202_s19 = smov 0   ;;  %s2204_s20 = smov 0  }
   0x6 LB: > { %s28_s21 = sadd.s32 1, %s2148_s19  ;;  %s85_s22 = sadd.s32 1, %s2140_s17  ;;  %s2152_s20 = sphi %s2204_s20, %s19_s20   ;;  %s2148_s19 = sphi %s2202_s19, %s2678_s19   ;;  %s2144_s18 = sphi %s2200_s18, %s2677_s18   ;;  %s2140_s17 = sphi %s2198_s17, %s2676_s17   ;;  %s2136_s16 = sphi %s2196_s16, %s2675_s16   ;;  %s2132_s15 = sphi %s2194_s15, %s2674_s15  }
   0x7   : > { %p29_p0 = scmp.ge.s32.totalorder %s28_s21, 2  ;;  %p92_p1 = scmp.ne.s32.totalorder %s2140_s17, %s2136_s16 }
   0x8   : > { %p93_p2 = scmp.eq.s32.totalorder %s2152_s20, 0  ;;  %p1803_p4 = scmp.lt.s32.totalorder %s2152_s20, 2 }
   0x9   : > { %s2680_s21 = smov (%p29_p0, %s28_s21), 0  ;;  %s193_s24 = sand.u32 1, %s2152_s20  }
   0xa   : > { %p94_p3 = por %p93_p2, %p92_p1  ;;  %s82_s23 = ssub.s32 %s2148_s19, %s2680_s21 }
   0xb   : > { %p83_p5 = scmp.eq.s32.totalorder %s82_s23, 0  ;;  %s195_s25 = sand.u32 1, %s2140_s17  }
   0xc   : > { %s1721_s26 = sshll.u32 %s2148_s19, 9  ;;  %s1592_s28 = sshll.u32 %s195_s25, 9 }
   0xd   : > { %s2238_s27 = scalar_select %p83_p5, %s2140_s17, %s85_s22  }
   0xe   : > { %s2245_s5 = scalar_lea.hbm %s2654_s2, %s1721_s26  ;;  %p2247_p6 = pnand %p1803_p4, %p94_p3 }
   0xf   : > { %s197_s7 = scalar_lea.vmem [#allocation6], %s1592_s28  ;;  %s2253_s9 = scalar_lea.sflag [#allocation7], %s193_s24 }
  0x10   : > { %s2663_s6 = scalar_select %p2247_p6, 1, 0 }
  0x11   : > { %s204_s8 = sshll.u32 %s197_s7, 4  ;;  %s1980_s10 = scalar_lea.hbm %s2245_s5, 8192  ;;  %s2251_s8 = int_to_ptr.vmem [resolvable:$true] %s204_s8 }
  0x12   : > { %p1981_p7 = scmp.ne.s32.totalorder %s2245_s5, %s1980_s10  ;;  %p2658_p8 = pneg %p2247_p6 }
  0x13   : > { %s1985_s13 = scalar_lea.hbm %s2654_s2, 16384  ;;  %p1986_p11 = scmp.lt.u32.totalorder %s2245_s5, %s2654_s2 }
  0x14   : > { %p1983_p9 = pnand %p2658_p8, %p1981_p7  ;;  %p1987_p12 = scmp.lt.u32.totalorder %s1985_s13, %s1980_s10 }
  0x15   : > { %p1989_p0 = scmp.lt.u32.totalorder %s1980_s10, %s2245_s5 }
  0x16   : > { %p1984_p10 = pneg %p1983_p9  ;;  %p1988_p13 = por %p1987_p12, %p1986_p11 }
  0x18   : > { %p1990_p1 = por %p1989_p0, %p1988_p13 }
  0x1a   : > { %p1991_p2 = pnand %p1990_p1, %p1984_p10 }
  0x1c   : > { %1994 = shalt.err (!%p1991_p2)
}
  0x1d   : > { %s1995_s23 = scalar_lea.vmem %s2251_s8, 8192  ;;  %s2154_s24 = smov [#allocation6]  }
  0x1e   : > { %p1996_p3 = scmp.ne.s32.totalorder %s2251_s8, %s1995_s23  ;;  %s2000_s26 = sshll.u32 %s2154_s24, 4  ;;  %s2001_s26 = int_to_ptr.vmem [resolvable:$false] %s2000_s26 }
  0x1f   : > { %s2002_s28 = scalar_lea.vmem %s2001_s26, 16384  ;;  %p2003_p7 = scmp.lt.s32.totalorder %s2251_s8, %s2001_s26 }
  0x20   : > { %p1998_p4 = pnand %p1996_p3, %p2658_p8  ;;  %p2004_p9 = scmp.lt.s32.totalorder %s2002_s28, %s1995_s23 }
  0x22   : > { %p1999_p5 = pneg %p1998_p4  ;;  %p2005_p11 = por %p2004_p9, %p2003_p7 }
  0x24   : > { %p2006_p12 = pnand %p2005_p11, %p1999_p5 }
  0x26   : > { %2009 = shalt.err (!%p2006_p12)
}
  0x27   : > { %s2155_s29 = smov 1024   ;;  %s2156_s30 = smov 512  }
  0x28   : > { %s2157_s7 = smov 32   ;;  %s2282_s10 = sadd.s32 4294967295, %s2152_s20  }
  0x29   : > { %1798 = dma.hbm_to_vmem [thread:$0]  (!%p2247_p6), %s2245_s5, 8192, %s2251_s8, %s2253_s9, %s2155_s29, %s2156_s30, %s2157_s7  }
  0x2a   : > { %p98_p10 = scmp.ne.s32.totalorder %s2136_s16, %s2132_s15  ;;  %p2657_p13 = scmp.eq.s32.totalorder %s2282_s10, 0 }
  0x2b   : > { %p1589_p0 = scmp.ge.s32.totalorder %s2152_s20, 1  ;;  %p161_p1 = scmp.lt.s32.totalorder %s2152_s20, 3 }
  0x2c   : > { %p2291_p2 = por %p2657_p13, %p98_p10  ;;  %s2158_s5 = smov [#allocation3]  }
  0x2d   : > { %p2295_p3 = pnand %p1589_p0, %p161_p1  ;;  %s176_s8 = sshll.u32 %s2158_s5, 4  ;;  %s2299_s8 = int_to_ptr.vmem [resolvable:$true] %s176_s8 }
  0x2e   : > { %s2664_s11 = scalar_select %p2291_p2, 1, 0 }
  0x2f   : > { %s2665_s12 = scalar_select %p2295_p3, 1, 0 }
  0x30   : > { %p1791_p4 = pneg %p2295_p3  ;;  %s1595_s15 = sshll.u32 %s195_s25, 8 }
  0x31   : > { %s1722_s13 = sshll.u32 %s2148_s19, 12  ;;  %s218_s26 = scalar_lea.vmem [#allocation8], %s1595_s15 }
  0x32   : > { %p2308_p5 = pnand %p1791_p4, %p2657_p13  ;;  %s2315_s24 = scalar_lea.hbm %s2655_s3, %s1722_s13 }
  0x33   : > { %s225_s28 = sshll.u32 %s218_s26, 4  ;;  %s2010_s25 = scalar_lea.hbm %s2652_s0, 512  ;;  %s2317_s28 = int_to_ptr.vmem [resolvable:$true] %s225_s28 }
  0x34   : > { %p2011_p7 = scmp.ne.s32.totalorder %s2652_s0, %s2010_s25  ;;  %p2012_p9 = pneg %p2308_p5 }
  0x35   : > { %p2017_p10 = scmp.lt.u32.totalorder %s2010_s25, %s2652_s0 }
  0x36   : > { %p2013_p11 = pnand %p2012_p9, %p2011_p7 }
  0x38   : > { %p2014_p12 = pneg %p2013_p11 }
  0x3a   : > { %p2019_p0 = pnand %p2017_p10, %p2014_p12 }
  0x3c   : > { %2022 = shalt.err (!%p2019_p0)
}
  0x3d   : > { %s2023_s15 = scalar_lea.vmem %s2299_s8, 512  ;;  %p2031_p8 = scmp.lt.s32.totalorder %s2299_s8, %s2299_s8 }
  0x3e   : > { %p2024_p1 = scmp.ne.s32.totalorder %s2299_s8, %s2023_s15  ;;  %p2032_p2 = scmp.lt.s32.totalorder %s2023_s15, %s2023_s15 }
  0x40   : > { %p2026_p4 = pnand %p2024_p1, %p2012_p9  ;;  %p2033_p3 = por %p2032_p2, %p2031_p8 }
  0x42   : > { %p2027_p13 = pneg %p2026_p4 }
  0x44   : > { %p2034_p6 = pnand %p2033_p3, %p2027_p13 }
  0x46   : > { %2037 = shalt.err (!%p2034_p6)
}
  0x47   : > { %s2159_s13 = smov 128   ;;  %s2160_s26 = smov 8  }
  0x48   : > { %1794 = dma.hbm_to_vmem [thread:$0]  (!%p2308_p5), %s2652_s0, 512, %s2299_s8, [#allocation4], %s2159_s13, %s2159_s13, %s2160_s26  }
  0x49   : > { %s2038_s25 = scalar_lea.hbm %s2315_s24, 4096  ;;  %p2667_p9 = scmp.ne.s32.totalorder %s2663_s6, 0 }
  0x4a   : > { %p2039_p7 = scmp.ne.s32.totalorder %s2315_s24, %s2038_s25  ;;  %s2043_s22 = scalar_lea.hbm %s2655_s3, 8192 }
  0x4b   : > { %p2668_p8 = pneg %p2667_p9  ;;  %p2044_p2 = scmp.lt.u32.totalorder %s2315_s24, %s2655_s3 }
  0x4c   : > { %p2045_p3 = scmp.lt.u32.totalorder %s2043_s22, %s2038_s25  ;;  %p2047_p12 = scmp.lt.u32.totalorder %s2038_s25, %s2315_s24 }
  0x4d   : > { %p2041_p13 = pnand %p2039_p7, %p2668_p8 }
  0x4e   : > { %p2046_p11 = por %p2045_p3, %p2044_p2 }
  0x4f   : > { %p2042_p6 = pneg %p2041_p13 }
  0x50   : > { %p2048_p10 = por %p2047_p12, %p2046_p11 }
  0x52   : > { %p2049_p0 = pnand %p2048_p10, %p2042_p6 }
  0x54   : > { %2052 = shalt.err (!%p2049_p0)
}
  0x55   : > { %s2053_s8 = scalar_lea.vmem %s2317_s28, 4096  ;;  %p2669_p1 = pmov %p2668_p8 }
  0x56   : > { %p2054_p5 = scmp.ne.s32.totalorder %s2317_s28, %s2053_s8  ;;  %s2161_s14 = smov [#allocation8]  }
  0x57   : > { %s2058_s13 = sshll.u32 %s2161_s14, 4  ;;  %s2059_s13 = int_to_ptr.vmem [resolvable:$false] %s2058_s13 }
  0x58   : > { %p2056_p4 = pnand %p2054_p5, %p2669_p1  ;;  %s2060_s26 = scalar_lea.vmem %s2059_s13, 8192 }
  0x59   : > { %p2061_p8 = scmp.lt.s32.totalorder %s2317_s28, %s2059_s13  ;;  %p2062_p13 = scmp.lt.s32.totalorder %s2060_s26, %s2053_s8 }
  0x5a   : > { %p2057_p7 = pneg %p2056_p4 }
  0x5b   : > { %p2063_p2 = por %p2062_p13, %p2061_p8 }
  0x5d   : > { %p2064_p3 = pnand %p2063_p2, %p2057_p7 }
  0x5f   : > { %2067 = shalt.err (!%p2064_p3)
}
  0x60   : > { %s2162_s29 = smov 64   ;;  %s2163_s30 = smov 4  }
  0x61   : > { %1801 = dma.hbm_to_vmem [thread:$0]  (!%p2667_p9), %s2315_s24, 4096, %s2317_s28, %s2253_s9, %s2162_s29, %s2162_s29, %s2163_s30  }
  0x62   : > { %p2670_p6 = scmp.ne.s32.totalorder %s2665_s12, 0 }
  0x63   : > { %p2671_p11 = scmp.eq.s32.totalorder (!%p2670_p6), %s2282_s10, 0 }
  0x64   : > { %237 = sbr.rel (%p2670_p6) target bundleno = 839 (0x347), region = 36 }
  0x6b   : > { %2119 = dma.done.wait (%p2671_p11), [#allocation4], 512   ;;  %p2672_p12 = pmov %p2671_p11 }
  0x6c   : > { %s243_s25 = sand.u32 1, %s2282_s10   ;;  %s245_s7 = sand.u32 1, %s2136_s16  }
  0x6d   : > { %2121 = vsyncadd (%p2672_p12), [#allocation4], 4294966784  ;;  %s1600_s5 = sshll.u32 %s245_s7, 9  ;;  %s244_s22 = scalar_lea.sflag [#allocation7], %s243_s25 }
  0x6e   : > { %s2372_s23 = scalar_lea.vmem [#allocation6], %s1600_s5  ;;  %p2673_p10 = scmp.ne.s32.totalorder %s2664_s11, 0 }
  0x70   : > { %2123 = dma.done.wait (%p2673_p10), %s244_s22, 12288  }
  0x71   : > { %2125 = vsyncadd (%p2673_p10), %s244_s22, 4294955008  ;;  %s1601_s6 = sshll.u32 %s245_s7, 8  ;;  %p1602_p9 = scmp.ne.s32.totalorder %s2144_s18, 0 }
  0x72   : > { %s2378_s9 = scalar_lea.vmem [#allocation8], %s1601_s6  ;;  %v2164_v0 = vmov (!%p1602_p9), 0.0  }
  0x73   : > { %289 = sbr.rel (%p1602_p9) target bundleno = 122 (0x7a), region = 52  ;;  %290 = vst [vmem:[#allocation2] sm:$0xff] (!%p1602_p9), %v2164_v0  ;;  %291 = vst [vmem:[#allocation2 + $0x8] sm:$0xff] (!%p1602_p9), %v2164_v0 }
  0x74   : > { %292 = vst [vmem:[#allocation2 + $0x10] sm:$0xff] (!%p1602_p9), %v2164_v0  ;;  %293 = vst [vmem:[#allocation2 + $0x18] sm:$0xff] (!%p1602_p9), %v2164_v0 }
  0x7a PF: > { %v2381_v1 = vld [vmem:[#allocation3 + $0x10] sm:$0xff]  ;;  %v2383_v2 = vld [vmem:[#allocation3] sm:$0xff]  ;;  %v2389_v5 = vld [vmem:[#allocation3 + $0x18] sm:$0xff]  ;;  %v2165_v63 = vmov 0   ;;  %p1716_p0 = scmp.ne.s32.totalorder %s2144_s18, 1 }
  0x7b   : > { %v300_v3 = vmul.f32 %v2381_v1, %v2381_v1  ;;  %v298_v4 = vmul.f32 %v2383_v2, %v2383_v2  ;;  %v2391_v6 = vld [vmem:[#allocation3 + $0x8] sm:$0xff]  ;;  %v301_v7 = vmul.f32 %v2389_v5, %v2389_v5  ;;  %v367_v9 = vld [vmem:[%s2372_s23] sm:$0xff]  ;;  %783 = vmatprep.mubr.bf16.mxu0 %v2165_v63  ;;  %836 = vmatprep.mubr.bf16.mxu1 %v2165_v63 }
  0x7c   : > { %v299_v8 = vmul.f32 %v2391_v6, %v2391_v6  ;;  %v371_v10 = vld [vmem:[%s2372_s23 + $0x20] sm:$0xff]  ;;  %v368_v11 = vld [vmem:[%s2372_s23 + $0x8] sm:$0xff] }
  0x7d   : > { %306 = vadd.xlane.f32.xlu1 %v300_v3  ;;  %302 = vadd.xlane.f32.xlu0 %v298_v4  ;;  %v1605_v12 = vcombine.high %v367_v9, %v371_v10  ;;  %v372_v13 = vld [vmem:[%s2372_s23 + $0x28] sm:$0xff]  ;;  %v1604_v15 = vcombine.low %v367_v9, %v371_v10  ;;  %v375_v17 = vld [vmem:[%s2372_s23 + $0x40] sm:$0xff]  ;;  %v2432_v9 = vld [vmem:[%s2372_s23 + $0x10] sm:$0xff] }
  0x7e   : > { %v1607_v14 = vcombine.high %v368_v11, %v372_v13  ;;  %v1606_v16 = vcombine.low %v368_v11, %v372_v13  ;;  %v379_v18 = vld [vmem:[%s2372_s23 + $0x60] sm:$0xff]  ;;  %v376_v19 = vld [vmem:[%s2372_s23 + $0x48] sm:$0xff]  ;;  %v2435_v10 = vld [vmem:[%s2372_s23 + $0x30] sm:$0xff] }
  0x7f   : > { %751 = vmatprep.subr.bf16.mxu0 %v1605_v12  ;;  %v1613_v20 = vcombine.high %v375_v17, %v379_v18  ;;  %v380_v21 = vld [vmem:[%s2372_s23 + $0x68] sm:$0xff]  ;;  %v1612_v23 = vcombine.low %v375_v17, %v379_v18  ;;  %v383_v25 = vld [vmem:[%s2372_s23 + $0x80] sm:$0xff]  ;;  %v2438_v11 = vld [vmem:[%s2372_s23 + $0x18] sm:$0xff] }
  0x80   : > { %804 = vmatprep.subr.bf16.mxu1 %v1607_v14  ;;  %752 = vmatpush1.bf16.msra.mxu0 %v1604_v15  ;;  %v1615_v22 = vcombine.high %v376_v19, %v380_v21  ;;  %v1614_v24 = vcombine.low %v376_v19, %v380_v21  ;;  %v387_v26 = vld [vmem:[%s2372_s23 + $0xa0] sm:$0xff]  ;;  %v384_v27 = vld [vmem:[%s2372_s23 + $0x88] sm:$0xff]  ;;  %v1608_v14 = vcombine.low %v2432_v9, %v2435_v10  ;;  %v2443_v15 = vld [vmem:[%s2372_s23 + $0x38] sm:$0xff] }
  0x81   : > { %308 = vadd.xlane.f32.xlu1 %v301_v7  ;;  %304 = vadd.xlane.f32.xlu0 %v299_v8  ;;  %v1621_v28 = vcombine.high %v383_v25, %v387_v26  ;;  %v388_v29 = vld [vmem:[%s2372_s23 + $0xa8] sm:$0xff]  ;;  %v1620_v31 = vcombine.low %v383_v25, %v387_v26  ;;  %v391_v33 = vld [vmem:[%s2372_s23 + $0xc0] sm:$0xff]  ;;  %v1610_v17 = vcombine.low %v2438_v11, %v2443_v15 }
  0x82   : > { %805 = vmatpush1.bf16.msra.mxu1 %v1606_v16  ;;  %753 = vmatprep.subr.bf16.mxu0 %v1613_v20  ;;  %v1623_v30 = vcombine.high %v384_v27, %v388_v29  ;;  %v1622_v32 = vcombine.low %v384_v27, %v388_v29  ;;  %v395_v34 = vld [vmem:[%s2372_s23 + $0xe0] sm:$0xff]  ;;  %v392_v35 = vld [vmem:[%s2372_s23 + $0xc8] sm:$0xff]  ;;  %v1609_v20 = vcombine.high %v2432_v9, %v2435_v10  ;;  %v397_v9 = vld [vmem:[%s2372_s23 + $0xf0] sm:$0xff] }
  0x83   : > { %806 = vmatprep.subr.bf16.mxu1 %v1615_v22  ;;  %v1629_v36 = vcombine.high %v391_v33, %v395_v34  ;;  %v396_v37 = vld [vmem:[%s2372_s23 + $0xe8] sm:$0xff]  ;;  %v1628_v39 = vcombine.low %v391_v33, %v395_v34  ;;  %v399_v41 = vld [vmem:[%s2372_s23 + $0x100] sm:$0xff]  ;;  %v1611_v21 = vcombine.high %v2438_v11, %v2443_v15  ;;  %v394_v10 = vld [vmem:[%s2372_s23 + $0xd8] sm:$0xff] }
  0x84   : > { %754 = vmatpush1.bf16.msra.mxu0 %v1612_v23  ;;  %v1631_v38 = vcombine.high %v392_v35, %v396_v37  ;;  %v1630_v40 = vcombine.low %v392_v35, %v396_v37  ;;  %v403_v42 = vld [vmem:[%s2372_s23 + $0x120] sm:$0xff]  ;;  %v400_v43 = vld [vmem:[%s2372_s23 + $0x108] sm:$0xff] }
  0x85   : > { %755 = vmatprep.subr.bf16.mxu0 %v1621_v28  ;;  %v1637_v44 = vcombine.high %v399_v41, %v403_v42  ;;  %v404_v45 = vld [vmem:[%s2372_s23 + $0x128] sm:$0xff]  ;;  %v1636_v47 = vcombine.low %v399_v41, %v403_v42  ;;  %v407_v49 = vld [vmem:[%s2372_s23 + $0x140] sm:$0xff] }
  0x86   : > { %807 = vmatpush1.bf16.msra.mxu1 %v1614_v24  ;;  %v1639_v46 = vcombine.high %v400_v43, %v404_v45  ;;  %v1638_v48 = vcombine.low %v400_v43, %v404_v45  ;;  %v411_v50 = vld [vmem:[%s2372_s23 + $0x160] sm:$0xff]  ;;  %v408_v51 = vld [vmem:[%s2372_s23 + $0x148] sm:$0xff] }
  0x87   : > { %808 = vmatprep.subr.bf16.mxu1 %v1623_v30  ;;  %v1645_v52 = vcombine.high %v407_v49, %v411_v50  ;;  %v412_v53 = vld [vmem:[%s2372_s23 + $0x168] sm:$0xff]  ;;  %v1644_v54 = vcombine.low %v407_v49, %v411_v50  ;;  %v415_v55 = vld [vmem:[%s2372_s23 + $0x180] sm:$0xff] }
  0x88   : > { %756 = vmatpush1.bf16.msra.mxu0 %v1620_v31  ;;  %v419_v56 = vld [vmem:[%s2372_s23 + $0x1a0] sm:$0xff]  ;;  %v1647_v57 = vcombine.high %v408_v51, %v412_v53  ;;  %v1646_v58 = vcombine.low %v408_v51, %v412_v53  ;;  %v416_v60 = vld [vmem:[%s2372_s23 + $0x188] sm:$0xff] }
  0x89   : > { %757 = vmatprep.subr.bf16.mxu0 %v1629_v36  ;;  %v1653_v59 = vcombine.high %v415_v55, %v419_v56  ;;  %v420_v61 = vld [vmem:[%s2372_s23 + $0x1a8] sm:$0xff]  ;;  %v423_v62 = vld [vmem:[%s2372_s23 + $0x1c0] sm:$0xff]  ;;  %v1652_v8 = vcombine.low %v415_v55, %v419_v56 }
  0x8a   : > { %809 = vmatpush1.bf16.msra.mxu1 %v1622_v32  ;;  %v1655_v0 = vcombine.high %v416_v60, %v420_v61  ;;  %v427_v3 = vld [vmem:[%s2372_s23 + $0x1e0] sm:$0xff]  ;;  %v424_v4 = vld [vmem:[%s2372_s23 + $0x1c8] sm:$0xff]  ;;  %v1654_v12 = vcombine.low %v416_v60, %v420_v61 }
  0x8b   : > { %810 = vmatprep.subr.bf16.mxu1 %v1631_v38  ;;  %v428_v7 = vld [vmem:[%s2372_s23 + $0x1e8] sm:$0xff]  ;;  %v1661_v13 = vcombine.high %v423_v62, %v427_v3  ;;  %v1660_v18 = vcombine.low %v423_v62, %v427_v3  ;;  %v377_v62 = vld [vmem:[%s2372_s23 + $0x50] sm:$0xff] }
  0x8c   : > { %758 = vmatpush1.bf16.msra.mxu0 %v1628_v39  ;;  %v1663_v16 = vcombine.high %v424_v4, %v428_v7  ;;  %v1662_v19 = vcombine.low %v424_v4, %v428_v7  ;;  %v381_v3 = vld [vmem:[%s2372_s23 + $0x70] sm:$0xff]  ;;  %v378_v4 = vld [vmem:[%s2372_s23 + $0x58] sm:$0xff] }
  0x8d   : > { %759 = vmatprep.subr.bf16.mxu0 %v1637_v44  ;;  %v382_v7 = vld [vmem:[%s2372_s23 + $0x78] sm:$0xff] }
  0x8e   : > { %811 = vmatpush1.bf16.msra.mxu1 %v1630_v40 }
  0x8f   : > { %812 = vmatprep.subr.bf16.mxu1 %v1639_v46 }
  0x90   : > { %760 = vmatpush1.bf16.msra.mxu0 %v1636_v47 }
  0x91   : > { %761 = vmatprep.subr.bf16.mxu0 %v1645_v52 }
  0x92   : > { %813 = vmatpush1.bf16.msra.mxu1 %v1638_v48 }
  0x93   : > { %814 = vmatprep.subr.bf16.mxu1 %v1647_v57 }
  0x94   : > { %762 = vmatpush1.bf16.msra.mxu0 %v1644_v54  ;;  %v1603_v54 = vld [vmem:[%s2653_s1] ss:$0 sm:$0xff] }
  0x95   : > { %763 = vmatprep.subr.bf16.mxu0 %v1653_v59  ;;  %v351_v55 = vmul.f32 %v1603_v54, %v2381_v1  ;;  %v352_v56 = vmul.f32 %v1603_v54, %v2389_v5  ;;  %v350_v59 = vmul.f32 %v1603_v54, %v2391_v6 }
  0x96   : > { %815 = vmatpush1.bf16.msra.mxu1 %v1646_v58  ;;  %v349_v58 = vmul.f32 %v1603_v54, %v2383_v2 }
  0x97   : > { %816 = vmatprep.subr.bf16.mxu1 %v1655_v0 }
  0x98   : > { %764 = vmatpush1.bf16.msra.mxu0 %v1652_v8 }
  0x99   : > { %765 = vmatprep.subr.bf16.mxu0 %v1661_v13 }
  0x9a   : > { %817 = vmatpush1.bf16.msra.mxu1 %v1654_v12 }
  0x9b   : > { %818 = vmatprep.subr.bf16.mxu1 %v1663_v16 }
  0x9c   : > { %766 = vmatpush1.bf16.msra.mxu0 %v1660_v18 }
  0x9d   : > { %857 = vmatprep.subr.bf16.mxu0 %v1609_v20  ;;  %v1617_v20 = vcombine.high %v377_v62, %v381_v3 }
  0x9e   : > { %819 = vmatpush1.bf16.msra.mxu1 %v1662_v19 }
  0x9f   : > { %910 = vmatprep.subr.bf16.mxu1 %v1611_v21  ;;  %v1619_v21 = vcombine.high %v378_v4, %v382_v7 }
 0x10a   : > { %v307_v22 = vpop.xlane.xlu1 %306  ;;  %v303_v23 = vpop.xlane.xlu0 %302 }
 0x10b   : > { %1900 = vrsqrt.f32 %v307_v22  ;;  %vm326_vm0 = vcmp.eq.f32.partialorder %v307_v22, inf  ;;  %v329_v27 = vand.u32 2147483648, %v307_v22  ;;  %vm328_vm1 = vcmp.eq.f32.partialorder %v307_v22, 0.0 }
 0x10c   : > { %1902 = vrsqrt.f32 %v303_v23  ;;  %vm312_vm2 = vcmp.eq.f32.partialorder %v303_v23, inf  ;;  %vm314_vm3 = vcmp.eq.f32.partialorder %v303_v23, 0.0  ;;  %v315_v32 = vand.u32 2147483648, %v303_v23 }
 0x10e   : > { %v309_v24 = vpop.xlane.xlu1 %308  ;;  %v305_v25 = vpop.xlane.xlu0 %304 }
 0x10f   : > { %1904 = vrsqrt.f32 %v309_v24  ;;  %vm333_vm4 = vcmp.eq.f32.partialorder %v309_v24, inf  ;;  %v336_v36 = vand.u32 2147483648, %v309_v24  ;;  %vm335_vm5 = vcmp.eq.f32.partialorder %v309_v24, 0.0 }
 0x110   : > { %1906 = vrsqrt.f32 %v305_v25  ;;  %vm319_vm6 = vcmp.eq.f32.partialorder %v305_v25, inf  ;;  %v322_v45 = vand.u32 2147483648, %v305_v25  ;;  %vm321_vm7 = vcmp.eq.f32.partialorder %v305_v25, 0.0 }
 0x115   : > { %v1901_v26 = vpop.eup %1900 }
 0x116   : > { %v1903_v28 = vpop.eup %1902  ;;  %v325_v29 = vmul.f32 %v1901_v26, %v307_v22  ;;  %v1616_v26 = vcombine.low %v377_v62, %v381_v3 }
 0x117   : > { %v311_v30 = vmul.f32 %v1903_v28, %v303_v23 }
 0x118   : > { %v327_v31 = vsel %vm326_vm0, %v307_v22, %v325_v29  ;;  %v385_v22 = vld [vmem:[%s2372_s23 + $0x90] sm:$0xff] }
 0x119   : > { %v1905_v33 = vpop.eup %1904  ;;  %v330_v34 = vsel %vm328_vm1, %v329_v27, %v327_v31  ;;  %v313_v35 = vsel %vm312_vm2, %v303_v23, %v311_v30  ;;  %v389_v23 = vld [vmem:[%s2372_s23 + $0xb0] sm:$0xff]  ;;  %v1618_v27 = vcombine.low %v378_v4, %v382_v7  ;;  %v1868_v7 = vld [vmem:[%s2378_s9 + $0x40] sm:$0xff]  }
 0x11a   : > { %v1907_v37 = vpop.eup %1906  ;;  %v340_v38 = vmul.f32 0.088388346, %v330_v34  ;;  %v316_v39 = vsel %vm314_vm3, %v315_v32, %v313_v35  ;;  %v332_v40 = vmul.f32 %v1905_v33, %v309_v24  ;;  %v1625_v28 = vcombine.high %v385_v22, %v389_v23  ;;  %v393_v30 = vld [vmem:[%s2372_s23 + $0xd0] sm:$0xff]  ;;  %v402_v34 = vld [vmem:[%s2372_s23 + $0x118] sm:$0xff] }
 0x11b   : > { %v338_v41 = vmul.f32 0.088388346, %v316_v39  ;;  %v318_v42 = vmul.f32 %v1907_v37, %v305_v25  ;;  %v1624_v11 = vcombine.low %v385_v22, %v389_v23  ;;  %v401_v32 = vld [vmem:[%s2372_s23 + $0x110] sm:$0xff]  ;;  %v406_v35 = vld [vmem:[%s2372_s23 + $0x138] sm:$0xff] }
 0x11c   : > { %v355_v43 = vadd.f32 1e-08, %v340_v38  ;;  %v334_v44 = vsel %vm333_vm4, %v309_v24, %v332_v40  ;;  %v386_v24 = vld [vmem:[%s2372_s23 + $0x98] sm:$0xff]  ;;  %v405_v33 = vld [vmem:[%s2372_s23 + $0x130] sm:$0xff]  ;;  %v1643_v39 = vcombine.high %v402_v34, %v406_v35 }
 0x11d   : > { %v353_v46 = vadd.f32 1e-08, %v338_v41  ;;  %v337_v47 = vsel %vm335_vm5, %v336_v36, %v334_v44  ;;  %v320_v48 = vsel %vm319_vm6, %v305_v25, %v318_v42  ;;  %v390_v25 = vld [vmem:[%s2372_s23 + $0xb8] sm:$0xff]  ;;  %v1632_v36 = vcombine.low %v393_v30, %v397_v9  ;;  %v409_v40 = vld [vmem:[%s2372_s23 + $0x150] sm:$0xff] }
 0x11e   : > { %v341_v49 = vmul.f32 0.088388346, %v337_v47  ;;  %v323_v50 = vsel %vm321_vm7, %v322_v45, %v320_v48  ;;  %1908 = vrcp.f32 %v355_v43  ;;  %v1627_v29 = vcombine.high %v386_v24, %v390_v25  ;;  %v413_v41 = vld [vmem:[%s2372_s23 + $0x170] sm:$0xff]  ;;  %v410_v42 = vld [vmem:[%s2372_s23 + $0x158] sm:$0xff] }
 0x11f   : > { %v339_v51 = vmul.f32 0.088388346, %v323_v50  ;;  %1910 = vrcp.f32 %v353_v46  ;;  %v1626_v15 = vcombine.low %v386_v24, %v390_v25  ;;  %v1641_v38 = vcombine.high %v401_v32, %v405_v33  ;;  %v414_v43 = vld [vmem:[%s2372_s23 + $0x178] sm:$0xff]  ;;  %v417_v48 = vld [vmem:[%s2372_s23 + $0x190] sm:$0xff] }
 0x120   : > { %v356_v52 = vadd.f32 1e-08, %v341_v49  ;;  %v1640_v44 = vcombine.low %v401_v32, %v405_v33  ;;  %v1642_v45 = vcombine.low %v402_v34, %v406_v35  ;;  %v1649_v46 = vcombine.high %v409_v40, %v413_v41  ;;  %v421_v49 = vld [vmem:[%s2372_s23 + $0x1b0] sm:$0xff]  ;;  %v418_v50 = vld [vmem:[%s2372_s23 + $0x198] sm:$0xff] }
 0x121   : > { %v354_v53 = vadd.f32 1e-08, %v339_v51  ;;  %v1651_v47 = vcombine.high %v410_v42, %v414_v43  ;;  %v422_v51 = vld [vmem:[%s2372_s23 + $0x1b8] sm:$0xff]  ;;  %v1657_v54 = vcombine.high %v417_v48, %v421_v49  ;;  %v1878_v22 = vld [vmem:[%s2378_s9 + $0x10] sm:$0xff]  }
 0x122   : > { %1912 = vrcp.f32 %v356_v52  ;;  %v1648_v52 = vcombine.low %v409_v40, %v413_v41  ;;  %v1879_v23 = vld [vmem:[%s2378_s9 + $0x90] sm:$0xff]   ;;  %v1880_v24 = vld [vmem:[%s2378_s9 + $0x58] sm:$0xff]  }
 0x123   : > { %1914 = vrcp.f32 %v354_v53  ;;  %v1650_v53 = vcombine.low %v410_v42, %v414_v43  ;;  %v1881_v25 = vld [vmem:[%s2378_s9 + $0xd8] sm:$0xff]   ;;  %v1894_v32 = vld [vmem:[%s2378_s9 + $0x30] sm:$0xff]  }
 0x124   : > { %v1895_v33 = vld [vmem:[%s2378_s9 + $0xb0] sm:$0xff]   ;;  %v1896_v34 = vld [vmem:[%s2378_s9 + $0x78] sm:$0xff]  }
 0x125   : > { %v1897_v35 = vld [vmem:[%s2378_s9 + $0xf8] sm:$0xff]  }
 0x128   : > { %v1909_v57 = vpop.eup %1908 }
 0x129   : > { %v1911_v60 = vpop.eup %1910  ;;  %v362_v8 = vmul.f32 %v1909_v57, %v351_v55  ;;  %v1659_v55 = vcombine.high %v418_v50, %v422_v51  ;;  %v429_v57 = vld [vmem:[%s2372_s23 + $0x1f0] sm:$0xff] }
 0x12a   : > { %v358_v13 = vmul.f32 %v1911_v60, %v349_v58  ;;  %v426_v58 = vld [vmem:[%s2372_s23 + $0x1d8] sm:$0xff]  ;;  %v1656_v60 = vcombine.low %v417_v48, %v421_v49 }
 0x12c   : > { %v1913_v61 = vpop.eup %1912 }
 0x12d   : > { %v1915_v0 = vpop.eup %1914  ;;  %v364_v12 = vmul.f32 %v1913_v61, %v352_v56  ;;  %v425_v56 = vld [vmem:[%s2372_s23 + $0x1d0] sm:$0xff]  ;;  %v1658_v61 = vcombine.low %v418_v50, %v422_v51 }
 0x12e   : > { %v360_v16 = vmul.f32 %v1915_v0, %v350_v59  ;;  %v430_v59 = vld [vmem:[%s2372_s23 + $0x1f8] sm:$0xff]  ;;  %v1665_v62 = vcombine.high %v425_v56, %v429_v57  ;;  %v1664_v3 = vcombine.low %v425_v56, %v429_v57 }
 0x12f   : > { %v2462_v18 = vpack.c.bf16 %v364_v12, %v362_v8  ;;  %v1667_v0 = vcombine.high %v426_v58, %v430_v59  ;;  %v1666_v4 = vcombine.low %v426_v58, %v430_v59  ;;  %v1869_v8 = vld [vmem:[%s2378_s9 + $0xc0] sm:$0xff]  }
 0x130   : > { %v2464_v19 = vpack.c.bf16 %v360_v16, %v358_v13  ;;  %v1870_v12 = vld [vmem:[%s2378_s9] sm:$0xff]   ;;  %v1872_v16 = vld [vmem:[%s2378_s9 + $0x48] sm:$0xff]  }
 0x131   : > { %v1871_v13 = vld [vmem:[%s2378_s9 + $0x80] sm:$0xff]  }
 0x132   : > { %784 = vmatmul.mubr.bf16.vlgmr.msra.gmra.mrb[0].mxu0 %v2464_v19  ;;  %837 = vmatmul.mubr.bf16.vlgmr.msra.gmra.mrb[0].mxu1 %v2464_v19 }
 0x133   : > { %858 = vmatpush1.bf16.msra.mxu0 %v1608_v14  ;;  %911 = vmatpush1.bf16.msra.mxu1 %v1610_v17  ;;  %v398_v14 = vld [vmem:[%s2372_s23 + $0xf8] sm:$0xff]  ;;  %v1633_v17 = vcombine.high %v393_v30, %v397_v9  ;;  %v1886_v30 = vld [vmem:[%s2378_s9 + $0x20] sm:$0xff]  }
 0x134   : > { %859 = vmatprep.subr.bf16.mxu0 %v1617_v20  ;;  %912 = vmatprep.subr.bf16.mxu1 %v1619_v21  ;;  %v1635_v31 = vcombine.high %v394_v10, %v398_v14  ;;  %v1634_v37 = vcombine.low %v394_v10, %v398_v14  ;;  %v1875_v20 = vld [vmem:[%s2378_s9 + $0x88] sm:$0xff]   ;;  %v1877_v21 = vld [vmem:[%s2378_s9 + $0xd0] sm:$0xff]   ;;  %v1887_v9 = vld [vmem:[%s2378_s9 + $0xa0] sm:$0xff]  }
 0x135   : > { %793 = vmatprep.mubr.bf16.mxu0 %v2165_v63  ;;  %846 = vmatprep.mubr.bf16.mxu1 %v2165_v63  ;;  %v1888_v10 = vld [vmem:[%s2378_s9 + $0x68] sm:$0xff]  }
 0x136   : > { %v1889_v14 = vld [vmem:[%s2378_s9 + $0xe8] sm:$0xff]  }
 0x137   : > { %860 = vmatpush1.bf16.msra.mxu0 %v1616_v26  ;;  %913 = vmatpush1.bf16.msra.mxu1 %v1618_v27  ;;  %v1882_v26 = vld [vmem:[%s2378_s9 + $0x18] sm:$0xff]  }
 0x138   : > { %861 = vmatprep.subr.bf16.mxu0 %v1625_v28  ;;  %914 = vmatprep.subr.bf16.mxu1 %v1627_v29  ;;  %v1883_v27 = vld [vmem:[%s2378_s9 + $0x98] sm:$0xff]   ;;  %v1884_v28 = vld [vmem:[%s2378_s9 + $0x60] sm:$0xff]  }
 0x139   : > { %v1885_v29 = vld [vmem:[%s2378_s9 + $0xe0] sm:$0xff]  }
 0x13a   : > { %794 = vmatmul.mubr.bf16.gmra.mrb[4].mxu0 %v2462_v18  ;;  %847 = vmatmul.mubr.bf16.gmra.mrb[4].mxu1 %v2462_v18 }
 0x13b   : > { %862 = vmatpush1.bf16.msra.mxu0 %v1624_v11  ;;  %915 = vmatpush1.bf16.msra.mxu1 %v1626_v15  ;;  %v1890_v11 = vld [vmem:[%s2378_s9 + $0x28] sm:$0xff]  }
 0x13c   : > { %863 = vmatprep.subr.bf16.mxu0 %v1633_v17  ;;  %916 = vmatprep.subr.bf16.mxu1 %v1635_v31  ;;  %v1891_v15 = vld [vmem:[%s2378_s9 + $0xa8] sm:$0xff]   ;;  %v1892_v17 = vld [vmem:[%s2378_s9 + $0x70] sm:$0xff]  }
 0x13d   : > { %889 = vmatprep.mubr.bf16.mxu0 %v2165_v63  ;;  %942 = vmatprep.mubr.bf16.mxu1 %v2165_v63  ;;  %v1893_v31 = vld [vmem:[%s2378_s9 + $0xf0] sm:$0xff]  }
 0x13f   : > { %864 = vmatpush1.bf16.msra.mxu0 %v1632_v36  ;;  %917 = vmatpush1.bf16.msra.mxu1 %v1634_v37  ;;  %v1898_v36 = vld [vmem:[%s2378_s9 + $0x38] sm:$0xff]  }
 0x140   : > { %865 = vmatprep.subr.bf16.mxu0 %v1641_v38  ;;  %918 = vmatprep.subr.bf16.mxu1 %v1643_v39  ;;  %v1899_v37 = vld [vmem:[%s2378_s9 + $0xb8] sm:$0xff]  }
 0x143   : > { %866 = vmatpush1.bf16.msra.mxu0 %v1640_v44  ;;  %919 = vmatpush1.bf16.msra.mxu1 %v1642_v45 }
 0x144   : > { %867 = vmatprep.subr.bf16.mxu0 %v1649_v46  ;;  %920 = vmatprep.subr.bf16.mxu1 %v1651_v47 }
 0x147   : > { %868 = vmatpush1.bf16.msra.mxu0 %v1648_v52  ;;  %921 = vmatpush1.bf16.msra.mxu1 %v1650_v53 }
 0x148   : > { %869 = vmatprep.subr.bf16.mxu0 %v1657_v54  ;;  %922 = vmatprep.subr.bf16.mxu1 %v1659_v55 }
 0x14b   : > { %870 = vmatpush1.bf16.msra.mxu0 %v1656_v60  ;;  %923 = vmatpush1.bf16.msra.mxu1 %v1658_v61 }
 0x14c   : > { %871 = vmatprep.subr.bf16.mxu0 %v1665_v62  ;;  %924 = vmatprep.subr.bf16.mxu1 %v1667_v0 }
 0x14f   : > { %872 = vmatpush1.bf16.msra.mxu0 %v1664_v3  ;;  %925 = vmatpush1.bf16.msra.mxu1 %v1666_v4 }
 0x150   : > { %1723 = vmatprep.subr.bf16.mxu0 %v1868_v7  ;;  %1751 = vmatprep.subr.bf16.mxu1 %v1869_v8 }
 0x152   : > { %890 = vmatmul.mubr.bf16.vlgmr.msra.gmra.mrb[8].mxu0 %v2464_v19  ;;  %943 = vmatmul.mubr.bf16.vlgmr.msra.gmra.mrb[8].mxu1 %v2464_v19  ;;  %v1873_v19 = vld [vmem:[%s2378_s9 + $0xc8] sm:$0xff]  }
 0x153   : > { %899 = vmatprep.mubr.bf16.mxu0 %v2165_v63  ;;  %952 = vmatprep.mubr.bf16.mxu1 %v2165_v63  ;;  %v1874_v63 = vld [vmem:[%s2378_s9 + $0x8] sm:$0xff]  }
 0x154   : > { %1724 = vmatpush3.bf16.msra.mxu0 %v1870_v12  ;;  %1752 = vmatpush3.bf16.msra.mxu1 %v1871_v13 }
 0x155   : > { %1725 = vmatprep.subr.bf16.mxu0 %v1872_v16  ;;  %1753 = vmatprep.subr.bf16.mxu1 %v1873_v19 }
 0x158   : > { %1726 = vmatpush3.bf16.msra.mxu0 %v1874_v63  ;;  %1754 = vmatpush3.bf16.msra.mxu1 %v1875_v20 }
 0x159   : > { %1755 = vmatprep.subr.bf16.mxu1 %v1877_v21 }
 0x15a   : > { %900 = vmatmul.mubr.bf16.gmra.mrb[12].mxu0 %v2462_v18  ;;  %953 = vmatmul.mubr.bf16.gmra.mrb[12].mxu1 %v2462_v18  ;;  %v1876_v18 = vld [vmem:[%s2378_s9 + $0x50] sm:$0xff]  }
 0x15b   : > { %1727 = vmatprep.subr.bf16.mxu0 %v1876_v18 }
 0x15c   : > { %1728 = vmatpush3.bf16.msra.mxu0 %v1878_v22  ;;  %1756 = vmatpush3.bf16.msra.mxu1 %v1879_v23 }
 0x15d   : > { %1729 = vmatprep.subr.bf16.mxu0 %v1880_v24  ;;  %1757 = vmatprep.subr.bf16.mxu1 %v1881_v25 }
 0x160   : > { %1730 = vmatpush3.bf16.msra.mxu0 %v1882_v26  ;;  %1758 = vmatpush3.bf16.msra.mxu1 %v1883_v27 }
 0x161   : > { %1731 = vmatprep.subr.bf16.mxu0 %v1884_v28  ;;  %1759 = vmatprep.subr.bf16.mxu1 %v1885_v29 }
 0x164   : > { %1732 = vmatpush3.bf16.msra.mxu0 %v1886_v30  ;;  %1760 = vmatpush3.bf16.msra.mxu1 %v1887_v9 }
 0x165   : > { %1733 = vmatprep.subr.bf16.mxu0 %v1888_v10  ;;  %1761 = vmatprep.subr.bf16.mxu1 %v1889_v14 }
 0x168   : > { %1734 = vmatpush3.bf16.msra.mxu0 %v1890_v11  ;;  %1762 = vmatpush3.bf16.msra.mxu1 %v1891_v15 }
 0x169   : > { %1735 = vmatprep.subr.bf16.mxu0 %v1892_v17  ;;  %1763 = vmatprep.subr.bf16.mxu1 %v1893_v31 }
 0x16c   : > { %1736 = vmatpush3.bf16.msra.mxu0 %v1894_v32  ;;  %1764 = vmatpush3.bf16.msra.mxu1 %v1895_v33 }
 0x16d   : > { %1737 = vmatprep.subr.bf16.mxu0 %v1896_v34  ;;  %1765 = vmatprep.subr.bf16.mxu1 %v1897_v35 }
 0x170   : > { %1738 = vmatpush3.bf16.msra.mxu0 %v1898_v36  ;;  %1766 = vmatpush3.bf16.msra.mxu1 %v1899_v37 }
 0x205   : > { %v2542_v38 = vpop.f32.mrb[0].mxu0  ;;  %v2544_v39 = vpop.f32.mrb[0].mxu1 }
 0x206   : > { %v1668_v40 = vmul.f32 -1.442695, %v2542_v38  ;;  %v1670_v41 = vmul.f32 -1.442695, %v2544_v39  ;;  %v2548_v42 = vpop.f32.mrb[1].mxu0  ;;  %v2550_v43 = vpop.f32.mrb[1].mxu1 }
 0x207   : > { %v1669_v44 = vmul.f32 -1.442695, %v2548_v42  ;;  %v1671_v45 = vmul.f32 -1.442695, %v2550_v43  ;;  %v2554_v46 = vpop.f32.mrb[2].mxu0  ;;  %v2556_v47 = vpop.f32.mrb[2].mxu1 }
 0x208   : > { %1916 = vpow2.f32 %v1668_v40  ;;  %v1672_v48 = vmul.f32 -1.442695, %v2554_v46  ;;  %v2559_v49 = vpop.f32.mrb[3].mxu0  ;;  %v2561_v50 = vpop.f32.mrb[3].mxu1  ;;  %v1674_v51 = vmul.f32 -1.442695, %v2556_v47 }
 0x209   : > { %1918 = vpow2.f32 %v1670_v41  ;;  %v1673_v52 = vmul.f32 -1.442695, %v2559_v49  ;;  %v1675_v53 = vmul.f32 -1.442695, %v2561_v50 }
 0x20a   : > { %1920 = vpow2.f32 %v1669_v44 }
 0x20b   : > { %1922 = vpow2.f32 %v1671_v45 }
 0x20c   : > { %1924 = vpow2.f32 %v1672_v48 }
 0x20d   : > { %1926 = vpow2.f32 %v1674_v51  ;;  %v2566_v54 = vpop.f32.mrb[4].mxu0  ;;  %v2568_v55 = vpop.f32.mrb[4].mxu1 }
 0x20e   : > { %1928 = vpow2.f32 %v1673_v52  ;;  %v1676_v56 = vmul.f32 -1.442695, %v2566_v54  ;;  %v1678_v57 = vmul.f32 -1.442695, %v2568_v55  ;;  %v2572_v58 = vpop.f32.mrb[5].mxu0  ;;  %v2574_v59 = vpop.f32.mrb[5].mxu1 }
 0x20f   : > { %1930 = vpow2.f32 %v1675_v53  ;;  %v1677_v60 = vmul.f32 -1.442695, %v2572_v58  ;;  %v1679_v61 = vmul.f32 -1.442695, %v2574_v59  ;;  %v2578_v62 = vpop.f32.mrb[6].mxu0  ;;  %v2580_v0 = vpop.f32.mrb[6].mxu1 }
 0x210   : > { %1932 = vpow2.f32 %v1676_v56  ;;  %v1680_v3 = vmul.f32 -1.442695, %v2578_v62  ;;  %v2583_v4 = vpop.f32.mrb[7].mxu0  ;;  %v2585_v7 = vpop.f32.mrb[7].mxu1  ;;  %v1682_v32 = vmul.f32 -1.442695, %v2580_v0 }
 0x211   : > { %1934 = vpow2.f32 %v1678_v57  ;;  %v1681_v35 = vmul.f32 -1.442695, %v2583_v4  ;;  %v1683_v37 = vmul.f32 -1.442695, %v2585_v7 }
 0x212   : > { %v1917_v8 = vpop.eup %1916  ;;  %1936 = vpow2.f32 %v1677_v60 }
 0x213   : > { %v1919_v12 = vpop.eup %1918  ;;  %v1011_v13 = vadd.f32 1.0, %v1917_v8  ;;  %1938 = vpow2.f32 %v1679_v61 }
 0x214   : > { %v1921_v16 = vpop.eup %1920  ;;  %v1013_v19 = vadd.f32 1.0, %v1919_v12  ;;  %1940 = vpow2.f32 %v1680_v3 }
 0x215   : > { %v1923_v63 = vpop.eup %1922  ;;  %1942 = vrcp.f32 %v1011_v13  ;;  %v1012_v20 = vadd.f32 1.0, %v1921_v16 }
 0x216   : > { %v1925_v18 = vpop.eup %1924  ;;  %1944 = vrcp.f32 %v1013_v19  ;;  %v1014_v21 = vadd.f32 1.0, %v1923_v63 }
 0x217   : > { %v1927_v22 = vpop.eup %1926  ;;  %1946 = vrcp.f32 %v1012_v20  ;;  %v1015_v23 = vadd.f32 1.0, %v1925_v18 }
 0x218   : > { %v1929_v24 = vpop.eup %1928  ;;  %1948 = vrcp.f32 %v1014_v21  ;;  %v1017_v25 = vadd.f32 1.0, %v1927_v22 }
 0x219   : > { %v1931_v26 = vpop.eup %1930  ;;  %1950 = vrcp.f32 %v1015_v23  ;;  %v1016_v27 = vadd.f32 1.0, %v1929_v24 }
 0x21a   : > { %v1933_v28 = vpop.eup %1932  ;;  %1952 = vrcp.f32 %v1017_v25  ;;  %v1018_v29 = vadd.f32 1.0, %v1931_v26 }
 0x21b   : > { %v1935_v30 = vpop.eup %1934  ;;  %1954 = vrcp.f32 %v1016_v27  ;;  %v1019_v9 = vadd.f32 1.0, %v1933_v28 }
 0x21c   : > { %v1937_v10 = vpop.eup %1936  ;;  %1956 = vrcp.f32 %v1018_v29  ;;  %v1021_v14 = vadd.f32 1.0, %v1935_v30 }
 0x21d   : > { %v1939_v11 = vpop.eup %1938  ;;  %1958 = vrcp.f32 %v1019_v9  ;;  %v1020_v15 = vadd.f32 1.0, %v1937_v10 }
 0x21e   : > { %v1941_v17 = vpop.eup %1940  ;;  %1960 = vrcp.f32 %v1021_v14  ;;  %v1022_v31 = vadd.f32 1.0, %v1939_v11 }
 0x21f   : > { %v1943_v33 = vpop.eup %1942  ;;  %1962 = vrcp.f32 %v1020_v15  ;;  %v1023_v34 = vadd.f32 1.0, %v1941_v17 }
 0x220   : > { %v1945_v36 = vpop.eup %1944  ;;  %1964 = vrcp.f32 %v1022_v31  ;;  %v1059_v48 = vmul.f32 %v1943_v33, %v2542_v38 }
 0x221   : > { %v1947_v40 = vpop.eup %1946  ;;  %1966 = vrcp.f32 %v1023_v34  ;;  %v1061_v51 = vmul.f32 %v1945_v36, %v2544_v39 }
 0x222   : > { %v1949_v41 = vpop.eup %1948  ;;  %1968 = vpow2.f32 %v1682_v32  ;;  %v1060_v53 = vmul.f32 %v1947_v40, %v2548_v42 }
 0x223   : > { %v1951_v44 = vpop.eup %1950  ;;  %1970 = vpow2.f32 %v1681_v35  ;;  %v1062_v56 = vmul.f32 %v1949_v41, %v2550_v43 }
 0x224   : > { %v1953_v45 = vpop.eup %1952  ;;  %1972 = vpow2.f32 %v1683_v37  ;;  %v1063_v3 = vmul.f32 %v1951_v44, %v2554_v46 }
 0x225   : > { %v1955_v52 = vpop.eup %1954  ;;  %v891_v57 = vpop.f32.mrb[8].mxu0  ;;  %v1065_v8 = vmul.f32 %v1953_v45, %v2556_v47 }
 0x226   : > { %v944_v60 = vpop.f32.mrb[8].mxu1  ;;  %v1957_v61 = vpop.eup %1956  ;;  %v1075_v12 = vmul.f32 %v1059_v48, %v891_v57  ;;  %v1064_v39 = vmul.f32 %v1955_v52, %v2559_v49 }
 0x227   : > { %v1077_v13 = vmul.f32 %v1061_v51, %v944_v60  ;;  %v893_v16 = vpop.f32.mrb[9].mxu0  ;;  %v946_v19 = vpop.f32.mrb[9].mxu1  ;;  %v1066_v63 = vmul.f32 %v1957_v61, %v2561_v50 }
 0x228   : > { %v1959_v38 = vpop.eup %1958  ;;  %v1076_v20 = vmul.f32 %v1060_v53, %v893_v16  ;;  %v1078_v42 = vmul.f32 %v1062_v56, %v946_v19  ;;  %v895_v18 = vpop.f32.mrb[10].mxu0 }
 0x229   : > { %v948_v43 = vpop.f32.mrb[10].mxu1  ;;  %v1961_v21 = vpop.eup %1960  ;;  %v1079_v22 = vmul.f32 %v1063_v3, %v895_v18  ;;  %v1067_v50 = vmul.f32 %v1959_v38, %v2566_v54 }
 0x22a   : > { %v1081_v23 = vmul.f32 %v1065_v8, %v948_v43  ;;  %v897_v24 = vpop.f32.mrb[11].mxu0  ;;  %v950_v46 = vpop.f32.mrb[11].mxu1  ;;  %v1069_v14 = vmul.f32 %v1961_v21, %v2568_v55  ;;  %v1091_v21 = vld [vmem:[#allocation2] sm:$0xff] }
 0x22b   : > { %v1963_v25 = vpop.eup %1962  ;;  %v1080_v47 = vmul.f32 %v1064_v39, %v897_v24  ;;  %v1082_v26 = vmul.f32 %v1066_v63, %v950_v46  ;;  %v1095_v28 = vpack.c.bf16 %v1079_v22, %v1075_v12 }
 0x22c   : > { %v1965_v27 = vpop.eup %1964  ;;  %v1097_v29 = vpack.c.bf16 %v1081_v23, %v1077_v13  ;;  %v1068_v15 = vmul.f32 %v1963_v25, %v2572_v58  ;;  %v1092_v25 = vld [vmem:[#allocation2 + $0x8] sm:$0xff] }
 0x22d   : > { %v1967_v30 = vpop.eup %1966  ;;  %v1096_v9 = vpack.c.bf16 %v1080_v47, %v1076_v20  ;;  %v1098_v49 = vpack.c.bf16 %v1082_v26, %v1078_v42  ;;  %v1070_v17 = vmul.f32 %v1965_v27, %v2574_v59  ;;  %v901_v32 = vpop.f32.mrb[12].mxu0 }
 0x22e   : > { %v1969_v10 = vpop.eup %1968  ;;  %v954_v33 = vpop.f32.mrb[12].mxu1  ;;  %v1071_v35 = vmul.f32 %v1967_v30, %v2578_v62  ;;  %v1083_v37 = vmul.f32 %v1067_v50, %v901_v32 }
 0x22f   : > { %v1971_v11 = vpop.eup %1970  ;;  %v1025_v31 = vadd.f32 1.0, %v1969_v10  ;;  %1391 = vmatprep.mubr.bf16.mxu0 %v1096_v9  ;;  %1440 = vmatprep.mubr.bf16.mxu1 %v1098_v49  ;;  %v1085_v40 = vmul.f32 %v1069_v14, %v954_v33  ;;  %v903_v41 = vpop.f32.mrb[13].mxu0 }
 0x230   : > { %v1973_v34 = vpop.eup %1972  ;;  %v1024_v36 = vadd.f32 1.0, %v1971_v11  ;;  %v956_v54 = vpop.f32.mrb[13].mxu1  ;;  %1392 = vmatmul.mubr.bf16.vlgmr.msra.gmra.mrb[16].mxu0 %v1095_v28  ;;  %1441 = vmatmul.mubr.bf16.vlgmr.msra.gmra.mrb[16].mxu1 %v1097_v29  ;;  %v1084_v58 = vmul.f32 %v1068_v15, %v903_v41  ;;  %v1093_v15 = vld [vmem:[#allocation2 + $0x10] sm:$0xff] }
 0x231   : > { %1974 = vrcp.f32 %v1025_v31  ;;  %v1026_v55 = vadd.f32 1.0, %v1973_v34  ;;  %v1086_v44 = vmul.f32 %v1070_v17, %v956_v54  ;;  %v905_v59 = vpop.f32.mrb[14].mxu0  ;;  %v958_v45 = vpop.f32.mrb[14].mxu1  ;;  %v1094_v34 = vld [vmem:[#allocation2 + $0x18] sm:$0xff] }
 0x232   : > { %1976 = vrcp.f32 %v1024_v36  ;;  %v1087_v48 = vmul.f32 %v1071_v35, %v905_v59  ;;  %v907_v51 = vpop.f32.mrb[15].mxu0  ;;  %v960_v52 = vpop.f32.mrb[15].mxu1 }
 0x233   : > { %1978 = vrcp.f32 %v1026_v55 }
 0x234   : > { %v1099_v53 = vpack.c.bf16 %v1087_v48, %v1083_v37 }
 0x23b   : > { %v1975_v62 = vpop.eup %1974 }
 0x23c   : > { %v1977_v56 = vpop.eup %1976  ;;  %v1073_v57 = vmul.f32 %v1975_v62, %v2580_v0 }
 0x23d   : > { %v1979_v60 = vpop.eup %1978  ;;  %v1072_v61 = vmul.f32 %v1977_v56, %v2583_v4 }
 0x23e   : > { %v1074_v3 = vmul.f32 %v1979_v60, %v2585_v7  ;;  %v1089_v8 = vmul.f32 %v1073_v57, %v958_v45 }
 0x23f   : > { %v1088_v12 = vmul.f32 %v1072_v61, %v907_v51 }
 0x240   : > { %v1101_v13 = vpack.c.bf16 %v1089_v8, %v1085_v40  ;;  %v1090_v16 = vmul.f32 %v1074_v3, %v960_v52 }
 0x241   : > { %v1100_v19 = vpack.c.bf16 %v1088_v12, %v1084_v58 }
 0x242   : > { %v1102_v38 = vpack.c.bf16 %v1090_v16, %v1086_v44 }
 0x243   : > { %1399 = vmatprep.mubr.bf16.mxu0 %v1100_v19 }
 0x244   : > { %1448 = vmatprep.mubr.bf16.mxu1 %v1102_v38  ;;  %1400 = vmatmul.mubr.bf16.gmra.mrb[20].mxu0 %v1099_v53 }
 0x245   : > { %1449 = vmatmul.mubr.bf16.gmra.mrb[20].mxu1 %v1101_v13 }
 0x303   : > { %v1739_v39 = vpop.f32.mrb[16].mxu0  ;;  %v1767_v63 = vpop.f32.mrb[16].mxu1 }
 0x304   : > { %v1740_v20 = vpop.f32.mrb[17].mxu0  ;;  %v1768_v42 = vpop.f32.mrb[17].mxu1 }
 0x305   : > { %v1741_v0 = vadd.f32 %v1740_v20, %v1739_v39  ;;  %v1769_v18 = vadd.f32 %v1768_v42, %v1767_v63  ;;  %v1742_v43 = vpop.f32.mrb[18].mxu0  ;;  %v1770_v4 = vpop.f32.mrb[18].mxu1 }
 0x306   : > { %v1743_v7 = vpop.f32.mrb[19].mxu0  ;;  %v1771_v22 = vpop.f32.mrb[19].mxu1 }
 0x307   : > { %v1443_v23 = vadd.f32 %v1769_v18, %v1741_v0  ;;  %v1744_v24 = vadd.f32 %v1743_v7, %v1742_v43  ;;  %v1772_v46 = vadd.f32 %v1771_v22, %v1770_v4 }
 0x309   : > { %v1457_v47 = vadd.f32 %v1443_v23, %v1091_v21  ;;  %v1446_v26 = vadd.f32 %v1772_v46, %v1744_v24 }
 0x30b   : > { %1461 = vst [vmem:[#allocation2] sm:$0xff] %v1457_v47  ;;  %v1458_v27 = vadd.f32 %v1446_v26, %v1092_v25 }
 0x30d   : > { %1462 = vst [vmem:[#allocation2 + $0x8] sm:$0xff] %v1458_v27 }
 0x312   : > { %v1469_v40 = vld [vmem:[#allocation2] sm:$0xff] (!%p1716_p0) }
 0x313   : > { %v1473_v55 = vadd.f32 (!%p1716_p0), %v1469_v40, %v2383_v2 }
 0x314   : > { %v1470_v41 = vld [vmem:[#allocation2 + $0x8] sm:$0xff] (!%p1716_p0) }
 0x315   : > { %v1474_v58 = vadd.f32 (!%p1716_p0), %v1470_v41, %v2391_v6  ;;  %1477 = vst [vmem:[#allocation9] sm:$0xff] (!%p1716_p0), %v1473_v55 }
 0x317   : > { %v1745_v28 = vpop.f32.mrb[20].mxu0  ;;  %1478 = vst [vmem:[#allocation9 + $0x8] sm:$0xff] (!%p1716_p0), %v1474_v58 }
 0x318   : > { %v1773_v29 = vpop.f32.mrb[20].mxu1  ;;  %v1746_v30 = vpop.f32.mrb[21].mxu0 }
 0x319   : > { %v1747_v9 = vadd.f32 %v1746_v30, %v1745_v28  ;;  %v1774_v49 = vpop.f32.mrb[21].mxu1  ;;  %v1748_v10 = vpop.f32.mrb[22].mxu0 }
 0x31a   : > { %v1775_v50 = vadd.f32 %v1774_v49, %v1773_v29  ;;  %v1776_v14 = vpop.f32.mrb[22].mxu1  ;;  %v1749_v11 = vpop.f32.mrb[23].mxu0 }
 0x31b   : > { %v1750_v17 = vadd.f32 %v1749_v11, %v1748_v10  ;;  %v1777_v31 = vpop.f32.mrb[23].mxu1 }
 0x31c   : > { %v1451_v32 = vadd.f32 %v1775_v50, %v1747_v9  ;;  %v1778_v33 = vadd.f32 %v1777_v31, %v1776_v14  ;;  %1468 = sbr.rel (%p1716_p0) target bundleno = 813 (0x32d), region = 56 }
 0x31e   : > { %v1459_v35 = vadd.f32 %v1451_v32, %v1093_v15  ;;  %v1454_v36 = vadd.f32 %v1778_v33, %v1750_v17 }
 0x320   : > { %1463 = vst [vmem:[#allocation2 + $0x10] sm:$0xff] %v1459_v35  ;;  %v1460_v37 = vadd.f32 %v1454_v36, %v1094_v34 }
 0x322   : > { %1464 = vst [vmem:[#allocation2 + $0x18] sm:$0xff] %v1460_v37 }
 0x327   : > { %v1471_v54 = vld [vmem:[#allocation2 + $0x10] sm:$0xff] }
 0x328   : > { %v1475_v44 = vadd.f32 %v1471_v54, %v2381_v1 }
 0x329   : > { %v1472_v59 = vld [vmem:[#allocation2 + $0x18] sm:$0xff] }
 0x32a   : > { %v1476_v45 = vadd.f32 %v1472_v59, %v2389_v5  ;;  %1479 = vst [vmem:[#allocation9 + $0x10] sm:$0xff] %v1475_v44 }
 0x32c   : > { %1480 = vst [vmem:[#allocation9 + $0x18] sm:$0xff] %v1476_v45 }
 0x32d PF: > { %p1805_p5 = scmp.eq.s32.totalorder %s2282_s10, 1  ;;  %s2166_s18 = smov [#allocation9]  }
 0x32e   : > { %s1490_s24 = sshll.u32 %s2166_s18, 4  ;;  %s1491_s24 = int_to_ptr.vmem [resolvable:$true] %s1490_s24 }
 0x32f   : > { %s2068_s28 = scalar_lea.vmem %s1491_s24, 512  ;;  %p2075_p8 = scmp.lt.s32.totalorder %s1491_s24, %s1491_s24 }
 0x330   : > { %p2069_p1 = scmp.ne.s32.totalorder %s1491_s24, %s2068_s28  ;;  %p2076_p13 = scmp.lt.s32.totalorder %s2068_s28, %s2068_s28 }
 0x332   : > { %p2070_p4 = pnand %p2069_p1, %p1805_p5  ;;  %p2077_p2 = por %p2076_p13, %p2075_p8 }
 0x334   : > { %p2071_p7 = pneg %p2070_p4 }
 0x336   : > { %p2078_p3 = pnand %p2077_p2, %p2071_p7 }
 0x338   : > { %2081 = shalt.err (!%p2078_p3)
}
 0x339   : > { %s2082_s14 = scalar_lea.hbm %s2656_s4, 512 }
 0x33a   : > { %p2083_p6 = scmp.ne.s32.totalorder %s2656_s4, %s2082_s14  ;;  %p2088_p10 = scmp.lt.u32.totalorder %s2082_s14, %s2656_s4 }
 0x33c   : > { %p2084_p11 = pnand %p2083_p6, %p1805_p5 }
 0x33e   : > { %p2085_p12 = pneg %p2084_p11 }
 0x340   : > { %p2090_p9 = pnand %p2088_p10, %p2085_p12 }
 0x342   : > { %2093 = shalt.err (!%p2090_p9)
}
 0x343   : > { %s2167_s25 = smov 128   ;;  %s2168_s7 = smov 8  }
 0x344   : > { %1788 = dma.vmem_to_hbm [thread:$0]  (%p1805_p5), %s1491_s24, 512, %s2656_s4, [#allocation5], %s2167_s25, %s2167_s25, %s2168_s7  }
 0x345   : > { %2127 = dma.done.wait (%p1805_p5), [#allocation5], 512  }
 0x346   : > { %2129 = vsyncadd (%p1805_p5), [#allocation5], 4294966784 }
 0x347 PF: > { %s19_s20 = sadd.s32 1, %s2152_s20   ;;  %s2674_s15 = smov %s2136_s16 }
 0x348   : > { %p16_p0 = scmp.ge.s32.totalorder %s19_s20, 4   ;;  %s2675_s16 = smov %s2140_s17 }
 0x349   : > { %s2676_s17 = smov %s2238_s27  ;;  %s2677_s18 = smov %s2148_s19 }
 0x34a   : > { %s2678_s19 = smov %s2680_s21  ;;  %18 = sbr.rel (!%p16_p0) target bundleno = 6 (0x6), region = 99 }
 0x351   :  { %1506 = vsyncpa [#allocation4], 1 }
 0x352   :  { %1508 = vsyncpa [#allocation4 + $0x1], 1 }
 0x353   :  { %1509 = vsyncpa [#allocation7], 1 }
 0x354   :  { %1511 = vsyncpa [#allocation7 + $0x1], 1 }
 0x355   :  { %1512 = vsyncpa [#allocation5], 1 }
 0x356   :  { %1514 = vsyncpa [#allocation5 + $0x1], 1 }

</bundles_post_ra>
